<compile_context>
chip_gen: v5e
topology: v5e:2x2
jax: 0.10.0
libtpu: 0.0.40
codegen_flags: <defaults>
</compile_context>

<pallas_src>
import math
from functools import partial

import jax
import jax.numpy as jnp
from jax.experimental import pallas as pl
from jax.experimental.pallas import tpu as pltpu


def _round_up(x, m):
    return ((x + m - 1) // m) * m


# ---------------------------------------------------------------------------
# Kernel 1: L2 norm over the rotating axis (lane axis = C_in*H*W, lane dense)
# ---------------------------------------------------------------------------
def _norm_kernel(x_ref, o_ref):
    x = x_ref[0]                                              # (r, D) f32
    o_ref[0] = jnp.sqrt(jnp.sum(x * x, axis=0, keepdims=True))  # (1, D)


def norm_over_rotating(x_flat):
    # x_flat: (b, r, D) f32  ->  (b, D) f32
    b, r, D = x_flat.shape
    out = pl.pallas_call(
        _norm_kernel,
        out_shape=jax.ShapeDtypeStruct((b, 1, D), jnp.float32),
        grid=(b,),
        in_specs=[pl.BlockSpec((1, r, D), lambda i: (i, 0, 0))],
        out_specs=pl.BlockSpec((1, 1, D), lambda i: (i, 0, 0)),
        compiler_params=pltpu.CompilerParams(
            dimension_semantics=("parallel",)),
    )(x_flat)
    return out[:, 0, :]


# ---------------------------------------------------------------------------
# Kernel 2: fused (phase) conv-transpose GEMM + rotation bind epilogue.
#
# grid = (batch, spatial_tiles, r+1); the last (arbitrary) axis walks the
# rotating slices 0..r-1 and finally the norm_x slice (-> chi, m_bind).
# Output lane axis = spatial tile (lane dense).
# ---------------------------------------------------------------------------
def _convT_bind_kernel(wT_ref, bias_ref, p_ref, phi_ref, m_ref, acc_ref):
    rstep = pl.program_id(2)
    nr = pl.num_programs(2)            # = d_rotating + 1

    @pl.when(rstep == 0)
    def _init():
        acc_ref[...] = jnp.zeros_like(acc_ref)

    # MXU: (C_out, K) @ (K, tile_M), bf16 in / f32 accumulate.
    fw = jnp.dot(wT_ref[...], p_ref[0, 0],
                 preferred_element_type=jnp.float32)          # (C_out, tile_M)

    @pl.when(rstep < nr - 1)
    def _rotating():
        phi = fw + bias_ref[0]                                # + (C_out, 1)
        phi_ref[0, 0] = phi
        acc_ref[...] += phi * phi

    @pl.when(rstep == nr - 1)
    def _finalize():
        # last slice is the conv of norm_x (= chi); finish m_bind in VMEM.
        m_ref[0] = 0.5 * jnp.sqrt(acc_ref[...]) + 0.5 * fw


def _convT_bind_phase(patches, wT, bias, n_rot, tile_m):
    # patches: (b, n_rot+1, K, M_pad) bf16
    # wT:      (C_out, K) bf16
    # bias:    (n_rot+1, C_out, 1) f32   (last row = zeros, unused)
    b, nr1, K, M_pad = patches.shape
    C_out = wT.shape[0]
    grid = (b, M_pad // tile_m, nr1)

    phi, m = pl.pallas_call(
        _convT_bind_kernel,
        out_shape=(
            jax.ShapeDtypeStruct((b, n_rot, C_out, M_pad), jnp.float32),
            jax.ShapeDtypeStruct((b, C_out, M_pad), jnp.float32)),
        grid=grid,
        in_specs=[
            pl.BlockSpec((C_out, K), lambda bi, mi, ri: (0, 0)),
            pl.BlockSpec((1, C_out, 1), lambda bi, mi, ri: (ri, 0, 0)),
            pl.BlockSpec((1, 1, K, tile_m), lambda bi, mi, ri: (bi, ri, 0, mi)),
        ],
        out_specs=(
            pl.BlockSpec((1, 1, C_out, tile_m),
                         lambda bi, mi, ri: (bi, jnp.minimum(ri, n_rot - 1), 0, mi)),
            pl.BlockSpec((1, C_out, tile_m), lambda bi, mi, ri: (bi, 0, mi)),
        ),
        scratch_shapes=[pltpu.VMEM((C_out, tile_m), jnp.float32)],
        compiler_params=pltpu.CompilerParams(
            dimension_semantics=("parallel", "parallel", "arbitrary"),
            vmem_limit_bytes=32 * 1024 * 1024),
    )(wT, bias, patches)
    return phi, m


# ---------------------------------------------------------------------------
# Full RotatingConvTranspose2d forward
# ---------------------------------------------------------------------------
@partial(jax.jit, static_argnums=(3, 4, 5))
def rotating_conv_transpose2d(x, weight, rotation_bias,
                              stride, padding, output_padding):
    """x: (b, r, C_in, H, W) -> (m_bind (b,C_out,Ho,Wo), phi (b,r,C_out,Ho,Wo))."""
    b, r, C_in, H, W = x.shape
    C_in_w, C_out, kH, kW = weight.shape
    assert C_in_w == C_in
    s, p, op = stride, padding, output_padding
    # TODO(synk): phases with no kernel taps (stride > kernel_size) unhandled.
    assert s <= kH and s <= kW
    H_out = (H - 1) * s - 2 * p + kH + op
    W_out = (W - 1) * s - 2 * p + kW + op

    # ---- ||x|| over the rotating axis (Pallas, lane-dense over C*H*W) -----
    norm_x = norm_over_rotating(x.reshape(b, r, C_in * H * W))
    norm_x = norm_x.reshape(b, 1, C_in, H, W)

    # rotating slices + norm slice share the same conv -> one fused kernel
    xin = jnp.concatenate([x, norm_x], axis=1)        # (b, r+1, C_in, H, W)

    # ---- static per-phase geometry (dense sub-convs, no zero insertion) ---
    def phase_geom(q, k, n_out_sp):
        taps = list(range(q, k, s))                   # kernel taps of phase q
        o0 = (q - p) % s                              # first output index
        n = len(range(o0, n_out_sp, s))               # #outputs of this phase
        base = (o0 + p - q) // s
        starts = [base - t for t in range(len(taps))]  # input start per tap
        return taps, o0, n, starts

    geoms_h = [phase_geom(qh, kH, H_out) for qh in range(s)]
    geoms_w = [phase_geom(qw, kW, W_out) for qw in range(s)]

    # one global zero-pad of the input so every tap is a plain static slice
    pad_t = max(0, -min(st for (_, _, _, sts) in geoms_h for st in sts))
    pad_b = max(0, max(st + n for (_, _, n, sts) in geoms_h for st in sts) - H)
    pad_l = max(0, -min(st for (_, _, _, sts) in geoms_w for st in sts))
    pad_r = max(0, max(st + n for (_, _, n, sts) in geoms_w for st in sts) - W)
    xin_p = jnp.pad(xin, ((0, 0), (0, 0), (0, 0),
                          (pad_t, pad_b), (pad_l, pad_r)))

    bias = jnp.concatenate(
        [rotation_bias.reshape(r, C_out).astype(jnp.float32),
         jnp.zeros((1, C_out), jnp.float32)], axis=0).reshape(r + 1, C_out, 1)

    phi = jnp.zeros((b, r, C_out, H_out, W_out), jnp.float32)
    m_bind = jnp.zeros((b, C_out, H_out, W_out), jnp.float32)

    for qh in range(s):
        _, oh0, n_h, starts_h = geoms_h[qh]
        for qw in range(s):
            _, ow0, n_w, starts_w = geoms_w[qw]
            if n_h == 0 or n_w == 0:
                continue

            # gather the few dense taps of this phase (static slices only)
            cols = []
            for st_h in starts_h:
                for st_w in starts_w:
                    cols.append(xin_p[:, :, :,
                                      st_h + pad_t: st_h + pad_t + n_h,
                                      st_w + pad_l: st_w + pad_l + n_w])
            T = len(cols)
            K = C_in * T
            M = n_h * n_w
            tile_m = min(1024, _round_up(M, 128))     # lane-dense tile
            M_pad = _round_up(M, tile_m)

            patches = jnp.stack(cols, axis=3)         # (b, r+1, C_in, T, n_h, n_w)
            patches = patches.reshape(b, r + 1, K, M)
            patches = jnp.pad(patches, ((0, 0), (0, 0), (0, 0), (0, M_pad - M)))
            patches = patches.astype(jnp.bfloat16)

            # weight slab of this phase; K ordered as (c_in, t_h, t_w) to match
            w_sub = weight[:, :, qh::s, qw::s]         # (C_in, C_out, T_h, T_w)
            wT = jnp.transpose(w_sub, (1, 0, 2, 3)).reshape(C_out, K)
            wT = wT.astype(jnp.bfloat16)

            phi_p, m_p = _convT_bind_phase(patches, wT, bias, r, tile_m)
            phi_p = phi_p[..., :M].reshape(b, r, C_out, n_h, n_w)
            m_p = m_p[..., :M].reshape(b, C_out, n_h, n_w)

            # disjoint strided scatter of this phase's output pixels
            phi = phi.at[:, :, :, oh0::s, ow0::s].set(phi_p)
            m_bind = m_bind.at[:, :, oh0::s, ow0::s].set(m_p)

    return m_bind, phi


# ---------------------------------------------------------------------------
# Pure-JAX reference (for correctness check)
# ---------------------------------------------------------------------------
def reference_forward(x, weight, rotation_bias, stride, padding, output_padding):
    b, r, C_in, H, W = x.shape
    C_out = weight.shape[1]
    kH, kW = weight.shape[2], weight.shape[3]

    def convT(inp):
        w = jnp.transpose(weight[:, :, ::-1, ::-1], (1, 0, 2, 3))  # OIHW
        pad = ((kH - 1 - padding, kH - 1 - padding + output_padding),
               (kW - 1 - padding, kW - 1 - padding + output_padding))
        return jax.lax.conv_general_dilated(
            inp, w, window_strides=(1, 1), padding=pad,
            lhs_dilation=(stride, stride),
            dimension_numbers=('NCHW', 'OIHW', 'NCHW'))

    norm_x = jnp.sqrt(jnp.sum(x * x, axis=1))
    fw = convT(x.reshape(b * r, C_in, H, W))
    Ho, Wo = fw.shape[-2:]
    phi = fw.reshape(b, r, C_out, Ho, Wo) + rotation_bias
    chi = convT(norm_x)
    norm_phi = jnp.sqrt(jnp.sum(phi * phi, axis=1))
    m_bind = 0.5 * norm_phi + 0.5 * chi
    return m_bind, phi


# ---------------------------------------------------------------------------
if __name__ == "__main__":
    # module hyper-parameters (small, consistent with the PyTorch module)
    n_in, n_out, d_rot = 4, 8, 4
    kernel_size, stride, padding, output_padding = 3, 2, 1, 1
    b, H, W = 2, 8, 8

    key = jax.random.PRNGKey(0)
    k_w, k_b, k_x = jax.random.split(key, 3)

    # ConvTranspose2d weight (C_in, C_out, kH, kW), PyTorch-style uniform init
    fan_in = n_out * kernel_size * kernel_size
    bound = 1.0 / math.sqrt(fan_in)
    weight = jax.random.uniform(k_w, (n_in, n_out, kernel_size, kernel_size),
                                jnp.float32, -bound, bound)
    rotation_bias = jax.random.uniform(k_b, (1, d_rot, n_out, 1, 1),
                                       jnp.float32, -bound, bound)
    x = jax.random.normal(k_x, (b, d_rot, n_in, H, W), jnp.float32)

    m_bind, phi = rotating_conv_transpose2d(x, weight, rotation_bias,
                                            stride, padding, output_padding)
    jax.block_until_ready((m_bind, phi))

    m_ref, phi_ref = reference_forward(x, weight, rotation_bias,
                                       stride, padding, output_padding)
    assert phi.shape == phi_ref.shape and m_bind.shape == m_ref.shape
    # bf16 MXU inputs with f32 accumulation -> allow ~1e-2 tolerance
    assert jnp.allclose(phi, phi_ref, atol=1e-2, rtol=1e-2), \
        float(jnp.max(jnp.abs(phi - phi_ref)))
    assert jnp.allclose(m_bind, m_ref, atol=1e-2, rtol=1e-2), \
        float(jnp.max(jnp.abs(m_bind - m_ref)))

    print("KERNEL_OK")
</pallas_src>

<mosaic_0001>
module attributes {stable_mosaic.version = 11 : i64} {
  func.func @_norm_kernel(%arg0: i32, %arg1: memref<1x4x256xf32, #tpu.memory_space<vmem>>, %arg2: memref<1x1x256xf32, #tpu.memory_space<vmem>>) attributes {dimension_semantics = [#tpu.dimension_semantics<parallel>], iteration_bounds = array<i64: 2>, scalar_prefetch = 0 : i64, scratch_operands = 0 : i64, tpu.core_type = #tpu.core_type<tc>, window_params = [{transform_indices = @transform_0, window_bounds = array<i64: 1, 4, 256>}, {transform_indices = @transform_1, window_bounds = array<i64: 1, 1, 256>}]} {
    %c0 = arith.constant 0 : index
    %c0_0 = arith.constant 0 : index
    %c0_1 = arith.constant 0 : index
    %0 = vector.load %arg1[%c0, %c0_0, %c0_1] : memref<1x4x256xf32, #tpu.memory_space<vmem>>, vector<1x4x256xf32>
    %1 = vector.shape_cast %0 : vector<1x4x256xf32> to vector<4x256xf32>
    %2 = arith.mulf %1, %1 : vector<4x256xf32>
    %cst = arith.constant dense<0.000000e+00> : vector<256xf32>
    %3 = vector.multi_reduction <add>, %2, %cst [0] : vector<4x256xf32> to vector<256xf32>
    %4 = vector.shape_cast %3 : vector<256xf32> to vector<1x256xf32>
    %5 = math.sqrt %4 : vector<1x256xf32>
    %c0_2 = arith.constant 0 : index
    %c0_3 = arith.constant 0 : index
    %c0_4 = arith.constant 0 : index
    %6 = vector.load %arg2[%c0_2, %c0_3, %c0_4] : memref<1x1x256xf32, #tpu.memory_space<vmem>>, vector<1x1x256xf32>
    %7 = vector.shape_cast %6 : vector<1x1x256xf32> to vector<1x256xf32>
    %8 = vector.shape_cast %5 : vector<1x256xf32> to vector<1x1x256xf32>
    tpu.vector_store %arg2[%c0_2, %c0_3, %c0_4], %8 {strides = array<i32>} : memref<1x1x256xf32, #tpu.memory_space<vmem>>, vector<1x1x256xf32>,
    return
  }
  func.func @transform_0(%arg0: i32) -> (i32, i32, i32) {
    %c0_i32 = arith.constant 0 : i32
    %c0_i32_0 = arith.constant 0 : i32
    %c0_i32_1 = arith.constant 0 : i32
    return %arg0, %c0_i32, %c0_i32_0 : i32, i32, i32
  }
  func.func @transform_1(%arg0: i32) -> (i32, i32, i32) {
    %c0_i32 = arith.constant 0 : i32
    %c0_i32_0 = arith.constant 0 : i32
    %c0_i32_1 = arith.constant 0 : i32
    return %arg0, %c0_i32, %c0_i32_0 : i32, i32, i32
  }
}

module attributes {stable_mosaic.version = 11 : i64} {
  func.func @_convT_bind_kernel(%arg0: i32, %arg1: i32, %arg2: i32, %arg3: memref<8x16xbf16, #tpu.memory_space<vmem>>, %arg4: memref<1x8x1xf32, #tpu.memory_space<vmem>>, %arg5: memref<1x1x16x128xbf16, #tpu.memory_space<vmem>>, %arg6: memref<1x1x8x128xf32, #tpu.memory_space<vmem>>, %arg7: memref<1x8x128xf32, #tpu.memory_space<vmem>>, %arg8: memref<8x128xf32, #tpu.memory_space<vmem>>) attributes {dimension_semantics = [#tpu.dimension_semantics<parallel>, #tpu.dimension_semantics<parallel>, #tpu.dimension_semantics<arbitrary>], iteration_bounds = array<i64: 2, 1, 5>, scalar_prefetch = 0 : i64, scratch_operands = 1 : i64, tpu.core_type = #tpu.core_type<tc>, window_params = [{pipeline_mode = #tpu.pipeline_mode<synchronous>, transform_indices = @transform_0, window_bounds = array<i64: 8, 16>}, {transform_indices = @transform_1, window_bounds = array<i64: 1, 8, 1>}, {transform_indices = @transform_2, window_bounds = array<i64: 1, 1, 16, 128>}, {transform_indices = @transform_3, window_bounds = array<i64: 1, 1, 8, 128>}, {transform_indices = @transform_4, window_bounds = array<i64: 1, 8, 128>}]} {
    %c0_i32 = arith.constant 0 : i32
    %0 = arith.cmpi eq, %arg2, %c0_i32 : i32
    %1 = arith.extui %0 : i1 to i32
    %c0_i32_0 = arith.constant 0 : i32
    %2 = arith.cmpi ne, %1, %c0_i32_0 : i32
    scf.if %2 {
      %cst_9 = arith.constant 0.000000e+00 : f32
      %13 = vector.broadcast %cst_9 : f32 to vector<8x128xf32>
      %c0_10 = arith.constant 0 : index
      %c0_11 = arith.constant 0 : index
      %14 = vector.load %arg8[%c0_10, %c0_11] : memref<8x128xf32, #tpu.memory_space<vmem>>, vector<8x128xf32>
      tpu.vector_store %arg8[%c0_10, %c0_11], %13 {strides = array<i32>} : memref<8x128xf32, #tpu.memory_space<vmem>>, vector<8x128xf32>,
    } else {
    }
    %c0 = arith.constant 0 : index
    %c0_1 = arith.constant 0 : index
    %3 = vector.load %arg3[%c0, %c0_1] : memref<8x16xbf16, #tpu.memory_space<vmem>>, vector<8x16xbf16>
    %c0_2 = arith.constant 0 : index
    %c0_3 = arith.constant 0 : index
    %c0_4 = arith.constant 0 : index
    %c0_5 = arith.constant 0 : index
    %4 = vector.load %arg5[%c0_2, %c0_3, %c0_4, %c0_5] : memref<1x1x16x128xbf16, #tpu.memory_space<vmem>>, vector<1x1x16x128xbf16>
    %5 = vector.shape_cast %4 : vector<1x1x16x128xbf16> to vector<16x128xbf16>
    %cst = arith.constant dense<0.000000e+00> : vector<8x128xf32>
    %6 = tpu.matmul %3, %5, %cst {dimension_numbers = #tpu.dot_dimension_numbers<[1], [0], [0], [1], [0, 0, 1, 1], [], []>} : vector<8x16xbf16>, vector<16x128xbf16>, vector<8x128xf32> -> vector<8x128xf32>
    %c4_i32 = arith.constant 4 : i32
    %7 = arith.cmpi slt, %arg2, %c4_i32 : i32
    %8 = arith.extui %7 : i1 to i32
    %c0_i32_6 = arith.constant 0 : i32
    %9 = arith.cmpi ne, %8, %c0_i32_6 : i32
    scf.if %9 {
      %c0_9 = arith.constant 0 : index
      %c0_10 = arith.constant 0 : index
      %c0_11 = arith.constant 0 : index
      %13 = vector.load %arg4[%c0_9, %c0_10, %c0_11] : memref<1x8x1xf32, #tpu.memory_space<vmem>>, vector<1x8x1xf32>
      %14 = vector.shape_cast %13 : vector<1x8x1xf32> to vector<8x1xf32>
      %15 = vector.broadcast %14 : vector<8x1xf32> to vector<8x128xf32>
      %16 = arith.addf %6, %15 : vector<8x128xf32>
      %c0_12 = arith.constant 0 : index
      %c0_13 = arith.constant 0 : index
      %c0_14 = arith.constant 0 : index
      %c0_15 = arith.constant 0 : index
      %17 = vector.load %arg6[%c0_12, %c0_13, %c0_14, %c0_15] : memref<1x1x8x128xf32, #tpu.memory_space<vmem>>, vector<1x1x8x128xf32>
      %18 = vector.shape_cast %17 : vector<1x1x8x128xf32> to vector<8x128xf32>
      %19 = vector.shape_cast %16 : vector<8x128xf32> to vector<1x1x8x128xf32>
      tpu.vector_store %arg6[%c0_12, %c0_13, %c0_14, %c0_15], %19 {strides = array<i32>} : memref<1x1x8x128xf32, #tpu.memory_space<vmem>>, vector<1x1x8x128xf32>,
      %c0_16 = arith.constant 0 : index
      %c0_17 = arith.constant 0 : index
      %20 = vector.load %arg8[%c0_16, %c0_17] : memref<8x128xf32, #tpu.memory_space<vmem>>, vector<8x128xf32>
      %21 = arith.mulf %16, %16 : vector<8x128xf32>
      %22 = arith.addf %20, %21 : vector<8x128xf32>
      %c0_18 = arith.constant 0 : index
      %c0_19 = arith.constant 0 : index
      %23 = vector.load %arg8[%c0_18, %c0_19] : memref<8x128xf32, #tpu.memory_space<vmem>>, vector<8x128xf32>
      tpu.vector_store %arg8[%c0_18, %c0_19], %22 {strides = array<i32>} : memref<8x128xf32, #tpu.memory_space<vmem>>, vector<8x128xf32>,
    } else {
    }
    %c4_i32_7 = arith.constant 4 : i32
    %10 = arith.cmpi eq, %arg2, %c4_i32_7 : i32
    %11 = arith.extui %10 : i1 to i32
    %c0_i32_8 = arith.constant 0 : i32
    %12 = arith.cmpi ne, %11, %c0_i32_8 : i32
    scf.if %12 {
      %c0_9 = arith.constant 0 : index
      %c0_10 = arith.constant 0 : index
      %13 = vector.load %arg8[%c0_9, %c0_10] : memref<8x128xf32, #tpu.memory_space<vmem>>, vector<8x128xf32>
      %14 = math.sqrt %13 : vector<8x128xf32>
      %cst_11 = arith.constant 5.000000e-01 : f32
      %15 = vector.broadcast %cst_11 : f32 to vector<8x128xf32>
      %16 = arith.mulf %15, %14 : vector<8x128xf32>
      %cst_12 = arith.constant 5.000000e-01 : f32
      %17 = vector.broadcast %cst_12 : f32 to vector<8x128xf32>
      %18 = arith.mulf %17, %6 : vector<8x128xf32>
      %19 = arith.addf %16, %18 : vector<8x128xf32>
      %c0_13 = arith.constant 0 : index
      %c0_14 = arith.constant 0 : index
      %c0_15 = arith.constant 0 : index
      %20 = vector.load %arg7[%c0_13, %c0_14, %c0_15] : memref<1x8x128xf32, #tpu.memory_space<vmem>>, vector<1x8x128xf32>
      %21 = vector.shape_cast %20 : vector<1x8x128xf32> to vector<8x128xf32>
      %22 = vector.shape_cast %19 : vector<8x128xf32> to vector<1x8x128xf32>
      tpu.vector_store %arg7[%c0_13, %c0_14, %c0_15], %22 {strides = array<i32>} : memref<1x8x128xf32, #tpu.memory_space<vmem>>, vector<1x8x128xf32>,
    } else {
    }
    return
  }
  func.func @transform_0(%arg0: i32, %arg1: i32, %arg2: i32) -> (i32, i32) {
    %c0_i32 = arith.constant 0 : i32
    %c0_i32_0 = arith.constant 0 : i32
    %c0_i32_1 = arith.constant 0 : i32
    return %c0_i32, %c0_i32_0 : i32, i32
  }
  func.func @transform_1(%arg0: i32, %arg1: i32, %arg2: i32) -> (i32, i32, i32) {
    %c0_i32 = arith.constant 0 : i32
    %c0_i32_0 = arith.constant 0 : i32
    %c0_i32_1 = arith.constant 0 : i32
    return %arg2, %c0_i32, %c0_i32_0 : i32, i32, i32
  }
  func.func @transform_2(%arg0: i32, %arg1: i32, %arg2: i32) -> (i32, i32, i32, i32) {
    %c0_i32 = arith.constant 0 : i32
    %c0_i32_0 = arith.constant 0 : i32
    return %arg0, %arg2, %c0_i32, %arg1 : i32, i32, i32, i32
  }
  func.func @transform_3(%arg0: i32, %arg1: i32, %arg2: i32) -> (i32, i32, i32, i32) {
    %c3_i32 = arith.constant 3 : i32
    %0 = arith.minsi %arg2, %c3_i32 : i32
    %c0_i32 = arith.constant 0 : i32
    %c0_i32_0 = arith.constant 0 : i32
    return %arg0, %0, %c0_i32, %arg1 : i32, i32, i32, i32
  }
  func.func @transform_4(%arg0: i32, %arg1: i32, %arg2: i32) -> (i32, i32, i32) {
    %c0_i32 = arith.constant 0 : i32
    %c0_i32_0 = arith.constant 0 : i32
    return %arg0, %c0_i32, %arg1 : i32, i32, i32
  }
}

module attributes {stable_mosaic.version = 11 : i64} {
  func.func @_convT_bind_kernel(%arg0: i32, %arg1: i32, %arg2: i32, %arg3: memref<8x8xbf16, #tpu.memory_space<vmem>>, %arg4: memref<1x8x1xf32, #tpu.memory_space<vmem>>, %arg5: memref<1x1x8x128xbf16, #tpu.memory_space<vmem>>, %arg6: memref<1x1x8x128xf32, #tpu.memory_space<vmem>>, %arg7: memref<1x8x128xf32, #tpu.memory_space<vmem>>, %arg8: memref<8x128xf32, #tpu.memory_space<vmem>>) attributes {dimension_semantics = [#tpu.dimension_semantics<parallel>, #tpu.dimension_semantics<parallel>, #tpu.dimension_semantics<arbitrary>], iteration_bounds = array<i64: 2, 1, 5>, scalar_prefetch = 0 : i64, scratch_operands = 1 : i64, tpu.core_type = #tpu.core_type<tc>, window_params = [{pipeline_mode = #tpu.pipeline_mode<synchronous>, transform_indices = @transform_0, window_bounds = array<i64: 8, 8>}, {transform_indices = @transform_1, window_bounds = array<i64: 1, 8, 1>}, {transform_indices = @transform_2, window_bounds = array<i64: 1, 1, 8, 128>}, {transform_indices = @transform_3, window_bounds = array<i64: 1, 1, 8, 128>}, {transform_indices = @transform_4, window_bounds = array<i64: 1, 8, 128>}]} {
    %c0_i32 = arith.constant 0 : i32
    %0 = arith.cmpi eq, %arg2, %c0_i32 : i32
    %1 = arith.extui %0 : i1 to i32
    %c0_i32_0 = arith.constant 0 : i32
    %2 = arith.cmpi ne, %1, %c0_i32_0 : i32
    scf.if %2 {
      %cst_9 = arith.constant 0.000000e+00 : f32
      %13 = vector.broadcast %cst_9 : f32 to vector<8x128xf32>
      %c0_10 = arith.constant 0 : index
      %c0_11 = arith.constant 0 : index
      %14 = vector.load %arg8[%c0_10, %c0_11] : memref<8x128xf32, #tpu.memory_space<vmem>>, vector<8x128xf32>
      tpu.vector_store %arg8[%c0_10, %c0_11], %13 {strides = array<i32>} : memref<8x128xf32, #tpu.memory_space<vmem>>, vector<8x128xf32>,
    } else {
    }
    %c0 = arith.constant 0 : index
    %c0_1 = arith.constant 0 : index
    %3 = vector.load %arg3[%c0, %c0_1] : memref<8x8xbf16, #tpu.memory_space<vmem>>, vector<8x8xbf16>
    %c0_2 = arith.constant 0 : index
    %c0_3 = arith.constant 0 : index
    %c0_4 = arith.constant 0 : index
    %c0_5 = arith.constant 0 : index
    %4 = vector.load %arg5[%c0_2, %c0_3, %c0_4, %c0_5] : memref<1x1x8x128xbf16, #tpu.memory_space<vmem>>, vector<1x1x8x128xbf16>
    %5 = vector.shape_cast %4 : vector<1x1x8x128xbf16> to vector<8x128xbf16>
    %cst = arith.constant dense<0.000000e+00> : vector<8x128xf32>
    %6 = tpu.matmul %3, %5, %cst {dimension_numbers = #tpu.dot_dimension_numbers<[1], [0], [0], [1], [0, 0, 1, 1], [], []>} : vector<8x8xbf16>, vector<8x128xbf16>, vector<8x128xf32> -> vector<8x128xf32>
    %c4_i32 = arith.constant 4 : i32
    %7 = arith.cmpi slt, %arg2, %c4_i32 : i32
    %8 = arith.extui %7 : i1 to i32
    %c0_i32_6 = arith.constant 0 : i32
    %9 = arith.cmpi ne, %8, %c0_i32_6 : i32
    scf.if %9 {
      %c0_9 = arith.constant 0 : index
      %c0_10 = arith.constant 0 : index
      %c0_11 = arith.constant 0 : index
      %13 = vector.load %arg4[%c0_9, %c0_10, %c0_11] : memref<1x8x1xf32, #tpu.memory_space<vmem>>, vector<1x8x1xf32>
      %14 = vector.shape_cast %13 : vector<1x8x1xf32> to vector<8x1xf32>
      %15 = vector.broadcast %14 : vector<8x1xf32> to vector<8x128xf32>
      %16 = arith.addf %6, %15 : vector<8x128xf32>
      %c0_12 = arith.constant 0 : index
      %c0_13 = arith.constant 0 : index
      %c0_14 = arith.constant 0 : index
      %c0_15 = arith.constant 0 : index
      %17 = vector.load %arg6[%c0_12, %c0_13, %c0_14, %c0_15] : memref<1x1x8x128xf32, #tpu.memory_space<vmem>>, vector<1x1x8x128xf32>
      %18 = vector.shape_cast %17 : vector<1x1x8x128xf32> to vector<8x128xf32>
      %19 = vector.shape_cast %16 : vector<8x128xf32> to vector<1x1x8x128xf32>
      tpu.vector_store %arg6[%c0_12, %c0_13, %c0_14, %c0_15], %19 {strides = array<i32>} : memref<1x1x8x128xf32, #tpu.memory_space<vmem>>, vector<1x1x8x128xf32>,
      %c0_16 = arith.constant 0 : index
      %c0_17 = arith.constant 0 : index
      %20 = vector.load %arg8[%c0_16, %c0_17] : memref<8x128xf32, #tpu.memory_space<vmem>>, vector<8x128xf32>
      %21 = arith.mulf %16, %16 : vector<8x128xf32>
      %22 = arith.addf %20, %21 : vector<8x128xf32>
      %c0_18 = arith.constant 0 : index
      %c0_19 = arith.constant 0 : index
      %23 = vector.load %arg8[%c0_18, %c0_19] : memref<8x128xf32, #tpu.memory_space<vmem>>, vector<8x128xf32>
      tpu.vector_store %arg8[%c0_18, %c0_19], %22 {strides = array<i32>} : memref<8x128xf32, #tpu.memory_space<vmem>>, vector<8x128xf32>,
    } else {
    }
    %c4_i32_7 = arith.constant 4 : i32
    %10 = arith.cmpi eq, %arg2, %c4_i32_7 : i32
    %11 = arith.extui %10 : i1 to i32
    %c0_i32_8 = arith.constant 0 : i32
    %12 = arith.cmpi ne, %11, %c0_i32_8 : i32
    scf.if %12 {
      %c0_9 = arith.constant 0 : index
      %c0_10 = arith.constant 0 : index
      %13 = vector.load %arg8[%c0_9, %c0_10] : memref<8x128xf32, #tpu.memory_space<vmem>>, vector<8x128xf32>
      %14 = math.sqrt %13 : vector<8x128xf32>
      %cst_11 = arith.constant 5.000000e-01 : f32
      %15 = vector.broadcast %cst_11 : f32 to vector<8x128xf32>
      %16 = arith.mulf %15, %14 : vector<8x128xf32>
      %cst_12 = arith.constant 5.000000e-01 : f32
      %17 = vector.broadcast %cst_12 : f32 to vector<8x128xf32>
      %18 = arith.mulf %17, %6 : vector<8x128xf32>
      %19 = arith.addf %16, %18 : vector<8x128xf32>
      %c0_13 = arith.constant 0 : index
      %c0_14 = arith.constant 0 : index
      %c0_15 = arith.constant 0 : index
      %20 = vector.load %arg7[%c0_13, %c0_14, %c0_15] : memref<1x8x128xf32, #tpu.memory_space<vmem>>, vector<1x8x128xf32>
      %21 = vector.shape_cast %20 : vector<1x8x128xf32> to vector<8x128xf32>
      %22 = vector.shape_cast %19 : vector<8x128xf32> to vector<1x8x128xf32>
      tpu.vector_store %arg7[%c0_13, %c0_14, %c0_15], %22 {strides = array<i32>} : memref<1x8x128xf32, #tpu.memory_space<vmem>>, vector<1x8x128xf32>,
    } else {
    }
    return
  }
  func.func @transform_0(%arg0: i32, %arg1: i32, %arg2: i32) -> (i32, i32) {
    %c0_i32 = arith.constant 0 : i32
    %c0_i32_0 = arith.constant 0 : i32
    %c0_i32_1 = arith.constant 0 : i32
    return %c0_i32, %c0_i32_0 : i32, i32
  }
  func.func @transform_1(%arg0: i32, %arg1: i32, %arg2: i32) -> (i32, i32, i32) {
    %c0_i32 = arith.constant 0 : i32
    %c0_i32_0 = arith.constant 0 : i32
    %c0_i32_1 = arith.constant 0 : i32
    return %arg2, %c0_i32, %c0_i32_0 : i32, i32, i32
  }
  func.func @transform_2(%arg0: i32, %arg1: i32, %arg2: i32) -> (i32, i32, i32, i32) {
    %c0_i32 = arith.constant 0 : i32
    %c0_i32_0 = arith.constant 0 : i32
    return %arg0, %arg2, %c0_i32, %arg1 : i32, i32, i32, i32
  }
  func.func @transform_3(%arg0: i32, %arg1: i32, %arg2: i32) -> (i32, i32, i32, i32) {
    %c3_i32 = arith.constant 3 : i32
    %0 = arith.minsi %arg2, %c3_i32 : i32
    %c0_i32 = arith.constant 0 : i32
    %c0_i32_0 = arith.constant 0 : i32
    return %arg0, %0, %c0_i32, %arg1 : i32, i32, i32, i32
  }
  func.func @transform_4(%arg0: i32, %arg1: i32, %arg2: i32) -> (i32, i32, i32) {
    %c0_i32 = arith.constant 0 : i32
    %c0_i32_0 = arith.constant 0 : i32
    return %arg0, %c0_i32, %arg1 : i32, i32, i32
  }
}

module attributes {stable_mosaic.version = 11 : i64} {
  func.func @_convT_bind_kernel(%arg0: i32, %arg1: i32, %arg2: i32, %arg3: memref<8x4xbf16, #tpu.memory_space<vmem>>, %arg4: memref<1x8x1xf32, #tpu.memory_space<vmem>>, %arg5: memref<1x1x4x128xbf16, #tpu.memory_space<vmem>>, %arg6: memref<1x1x8x128xf32, #tpu.memory_space<vmem>>, %arg7: memref<1x8x128xf32, #tpu.memory_space<vmem>>, %arg8: memref<8x128xf32, #tpu.memory_space<vmem>>) attributes {dimension_semantics = [#tpu.dimension_semantics<parallel>, #tpu.dimension_semantics<parallel>, #tpu.dimension_semantics<arbitrary>], iteration_bounds = array<i64: 2, 1, 5>, scalar_prefetch = 0 : i64, scratch_operands = 1 : i64, tpu.core_type = #tpu.core_type<tc>, window_params = [{pipeline_mode = #tpu.pipeline_mode<synchronous>, transform_indices = @transform_0, window_bounds = array<i64: 8, 4>}, {transform_indices = @transform_1, window_bounds = array<i64: 1, 8, 1>}, {transform_indices = @transform_2, window_bounds = array<i64: 1, 1, 4, 128>}, {transform_indices = @transform_3, window_bounds = array<i64: 1, 1, 8, 128>}, {transform_indices = @transform_4, window_bounds = array<i64: 1, 8, 128>}]} {
    %c0_i32 = arith.constant 0 : i32
    %0 = arith.cmpi eq, %arg2, %c0_i32 : i32
    %1 = arith.extui %0 : i1 to i32
    %c0_i32_0 = arith.constant 0 : i32
    %2 = arith.cmpi ne, %1, %c0_i32_0 : i32
    scf.if %2 {
      %cst_9 = arith.constant 0.000000e+00 : f32
      %13 = vector.broadcast %cst_9 : f32 to vector<8x128xf32>
      %c0_10 = arith.constant 0 : index
      %c0_11 = arith.constant 0 : index
      %14 = vector.load %arg8[%c0_10, %c0_11] : memref<8x128xf32, #tpu.memory_space<vmem>>, vector<8x128xf32>
      tpu.vector_store %arg8[%c0_10, %c0_11], %13 {strides = array<i32>} : memref<8x128xf32, #tpu.memory_space<vmem>>, vector<8x128xf32>,
    } else {
    }
    %c0 = arith.constant 0 : index
    %c0_1 = arith.constant 0 : index
    %3 = vector.load %arg3[%c0, %c0_1] : memref<8x4xbf16, #tpu.memory_space<vmem>>, vector<8x4xbf16>
    %c0_2 = arith.constant 0 : index
    %c0_3 = arith.constant 0 : index
    %c0_4 = arith.constant 0 : index
    %c0_5 = arith.constant 0 : index
    %4 = vector.load %arg5[%c0_2, %c0_3, %c0_4, %c0_5] : memref<1x1x4x128xbf16, #tpu.memory_space<vmem>>, vector<1x1x4x128xbf16>
    %5 = vector.shape_cast %4 : vector<1x1x4x128xbf16> to vector<4x128xbf16>
    %cst = arith.constant dense<0.000000e+00> : vector<8x128xf32>
    %6 = tpu.matmul %3, %5, %cst {dimension_numbers = #tpu.dot_dimension_numbers<[1], [0], [0], [1], [0, 0, 1, 1], [], []>} : vector<8x4xbf16>, vector<4x128xbf16>, vector<8x128xf32> -> vector<8x128xf32>
    %c4_i32 = arith.constant 4 : i32
    %7 = arith.cmpi slt, %arg2, %c4_i32 : i32
    %8 = arith.extui %7 : i1 to i32
    %c0_i32_6 = arith.constant 0 : i32
    %9 = arith.cmpi ne, %8, %c0_i32_6 : i32
    scf.if %9 {
      %c0_9 = arith.constant 0 : index
      %c0_10 = arith.constant 0 : index
      %c0_11 = arith.constant 0 : index
      %13 = vector.load %arg4[%c0_9, %c0_10, %c0_11] : memref<1x8x1xf32, #tpu.memory_space<vmem>>, vector<1x8x1xf32>
      %14 = vector.shape_cast %13 : vector<1x8x1xf32> to vector<8x1xf32>
      %15 = vector.broadcast %14 : vector<8x1xf32> to vector<8x128xf32>
      %16 = arith.addf %6, %15 : vector<8x128xf32>
      %c0_12 = arith.constant 0 : index
      %c0_13 = arith.constant 0 : index
      %c0_14 = arith.constant 0 : index
      %c0_15 = arith.constant 0 : index
      %17 = vector.load %arg6[%c0_12, %c0_13, %c0_14, %c0_15] : memref<1x1x8x128xf32, #tpu.memory_space<vmem>>, vector<1x1x8x128xf32>
      %18 = vector.shape_cast %17 : vector<1x1x8x128xf32> to vector<8x128xf32>
      %19 = vector.shape_cast %16 : vector<8x128xf32> to vector<1x1x8x128xf32>
      tpu.vector_store %arg6[%c0_12, %c0_13, %c0_14, %c0_15], %19 {strides = array<i32>} : memref<1x1x8x128xf32, #tpu.memory_space<vmem>>, vector<1x1x8x128xf32>,
      %c0_16 = arith.constant 0 : index
      %c0_17 = arith.constant 0 : index
      %20 = vector.load %arg8[%c0_16, %c0_17] : memref<8x128xf32, #tpu.memory_space<vmem>>, vector<8x128xf32>
      %21 = arith.mulf %16, %16 : vector<8x128xf32>
      %22 = arith.addf %20, %21 : vector<8x128xf32>
      %c0_18 = arith.constant 0 : index
      %c0_19 = arith.constant 0 : index
      %23 = vector.load %arg8[%c0_18, %c0_19] : memref<8x128xf32, #tpu.memory_space<vmem>>, vector<8x128xf32>
      tpu.vector_store %arg8[%c0_18, %c0_19], %22 {strides = array<i32>} : memref<8x128xf32, #tpu.memory_space<vmem>>, vector<8x128xf32>,
    } else {
    }
    %c4_i32_7 = arith.constant 4 : i32
    %10 = arith.cmpi eq, %arg2, %c4_i32_7 : i32
    %11 = arith.extui %10 : i1 to i32
    %c0_i32_8 = arith.constant 0 : i32
    %12 = arith.cmpi ne, %11, %c0_i32_8 : i32
    scf.if %12 {
      %c0_9 = arith.constant 0 : index
      %c0_10 = arith.constant 0 : index
      %13 = vector.load %arg8[%c0_9, %c0_10] : memref<8x128xf32, #tpu.memory_space<vmem>>, vector<8x128xf32>
      %14 = math.sqrt %13 : vector<8x128xf32>
      %cst_11 = arith.constant 5.000000e-01 : f32
      %15 = vector.broadcast %cst_11 : f32 to vector<8x128xf32>
      %16 = arith.mulf %15, %14 : vector<8x128xf32>
      %cst_12 = arith.constant 5.000000e-01 : f32
      %17 = vector.broadcast %cst_12 : f32 to vector<8x128xf32>
      %18 = arith.mulf %17, %6 : vector<8x128xf32>
      %19 = arith.addf %16, %18 : vector<8x128xf32>
      %c0_13 = arith.constant 0 : index
      %c0_14 = arith.constant 0 : index
      %c0_15 = arith.constant 0 : index
      %20 = vector.load %arg7[%c0_13, %c0_14, %c0_15] : memref<1x8x128xf32, #tpu.memory_space<vmem>>, vector<1x8x128xf32>
      %21 = vector.shape_cast %20 : vector<1x8x128xf32> to vector<8x128xf32>
      %22 = vector.shape_cast %19 : vector<8x128xf32> to vector<1x8x128xf32>
      tpu.vector_store %arg7[%c0_13, %c0_14, %c0_15], %22 {strides = array<i32>} : memref<1x8x128xf32, #tpu.memory_space<vmem>>, vector<1x8x128xf32>,
    } else {
    }
    return
  }
  func.func @transform_0(%arg0: i32, %arg1: i32, %arg2: i32) -> (i32, i32) {
    %c0_i32 = arith.constant 0 : i32
    %c0_i32_0 = arith.constant 0 : i32
    %c0_i32_1 = arith.constant 0 : i32
    return %c0_i32, %c0_i32_0 : i32, i32
  }
  func.func @transform_1(%arg0: i32, %arg1: i32, %arg2: i32) -> (i32, i32, i32) {
    %c0_i32 = arith.constant 0 : i32
    %c0_i32_0 = arith.constant 0 : i32
    %c0_i32_1 = arith.constant 0 : i32
    return %arg2, %c0_i32, %c0_i32_0 : i32, i32, i32
  }
  func.func @transform_2(%arg0: i32, %arg1: i32, %arg2: i32) -> (i32, i32, i32, i32) {
    %c0_i32 = arith.constant 0 : i32
    %c0_i32_0 = arith.constant 0 : i32
    return %arg0, %arg2, %c0_i32, %arg1 : i32, i32, i32, i32
  }
  func.func @transform_3(%arg0: i32, %arg1: i32, %arg2: i32) -> (i32, i32, i32, i32) {
    %c3_i32 = arith.constant 3 : i32
    %0 = arith.minsi %arg2, %c3_i32 : i32
    %c0_i32 = arith.constant 0 : i32
    %c0_i32_0 = arith.constant 0 : i32
    return %arg0, %0, %c0_i32, %arg1 : i32, i32, i32, i32
  }
  func.func @transform_4(%arg0: i32, %arg1: i32, %arg2: i32) -> (i32, i32, i32) {
    %c0_i32 = arith.constant 0 : i32
    %c0_i32_0 = arith.constant 0 : i32
    return %arg0, %c0_i32, %arg1 : i32, i32, i32
  }
}

</mosaic_0001>

<bundles_post_ra>
// kernel: squeeze.1
= control target key start
LH: loop header
LB: loop body
LE: loop exit
PB: predicated region body
PF: predicated region fallthrough
CT: control target
= control target key end

     0   :  { %s267_s10 = smov 120   ;;  %s268_s11 = smov 88   ;;  %vm33_vm0 = vcmask 64512   ;;  %s343_s0 = inlined_call_operand.vmem [shape: bf16[2,256], index: 0, kind: input, shape index: {}]   ;;  %s344_s1 = inlined_call_operand.vmem [shape: bf16[2,1,4,8,8], index: 1, kind: output, shape index: {}]  }
   0x1   :  { %v220_v0 = vld [vmem:[%s343_s0 + $0x1] sm:$0x1]  ;;  %v28_v1 = vld [vmem:[%s343_s0] sm:$0x1]  ;;  %s266_s0 = smov 104   ;;  %s269_s12 = smov 96  }
   0x2   :  { %v15_v2 = vunpack.c.l.bf16 %v220_v0  ;;  %v29_v3 = vunpack.c.l.bf16 %v28_v1  ;;  %s270_s13 = smov 112   ;;  %s271_s14 = smov 80  }
   0x3   :  { %s272_s15 = smov 64   ;;  %s273_s16 = smov 72  }
   0x4   :  { %18 = vst [vmem:[#allocation1 + $0x8] sm:$0x3] %v15_v2  ;;  %s274_s17 = smov 56   ;;  %s275_s18 = smov 40  }
   0x5   :  { %31 = vst [vmem:[#allocation1] sm:$0x3] %v29_v3  ;;  %s276_s19 = smov 48   ;;  %s277_s20 = smov 32  }
   0x6   :  { %s278_s21 = smov 16   ;;  %s279_s22 = smov 24  }
   0x7   :  { %s280_s23 = smov 8  }
   0xb   :  { %v38_v6 = vld [vmem:[#allocation1 + $0x8] sm:$0x3]  }
   0xc   :  { %v60_v4 = vld.sshfl [vmem:[#allocation1] sm:$0xff pattern:$0x99999180]   ;;  %43 = vst.msk [vmem:[#allocation0 + $0x2f] sm:$0x2] %vm33_vm0, %v38_v6  }
   0xd   :  { %61 = vrot.lane.b32.xlu1 %v60_v4, %s266_s0  ;;  %45 = vrot.lane.b32.xlu0 %v60_v4, %s267_s10  ;;  %v32_v5 = vld [vmem:[#allocation1] sm:$0x3]   ;;  %41 = vst.msk [vmem:[#allocation0 + $0x10] sm:$0x1] %vm33_vm0, %v38_v6  }
   0xe   :  { %77 = vrot.lane.b32.xlu2 %v60_v4, %s268_s11  ;;  %36 = vst.msk [vmem:[#allocation0 + $0x1f] sm:$0x2] %vm33_vm0, %v32_v5  }
   0xf   :  { %34 = vst.msk [vmem:[#allocation0] sm:$0x1] %vm33_vm0, %v32_v5  }
  0x15   :  { %69 = vrot.lane.b32.xlu1 %v60_v4, %s269_s12  ;;  %53 = vrot.lane.b32.xlu0 %v60_v4, %s270_s13 }
  0x16   :  { %85 = vrot.lane.b32.xlu2 %v60_v4, %s271_s14 }
  0x1d   :  { %101 = vrot.lane.b32.xlu1 %v60_v4, %s272_s15  ;;  %93 = vrot.lane.b32.xlu0 %v60_v4, %s273_s16 }
  0x1e   :  { %109 = vrot.lane.b32.xlu2 %v60_v4, %s274_s17 }
  0x25   :  { %125 = vrot.lane.b32.xlu1 %v60_v4, %s275_s18  ;;  %117 = vrot.lane.b32.xlu0 %v60_v4, %s276_s19 }
  0x26   :  { %133 = vrot.lane.b32.xlu2 %v60_v4, %s277_s20 }
  0x2d   :  { %149 = vrot.lane.b32.xlu1 %v60_v4, %s278_s21  ;;  %141 = vrot.lane.b32.xlu0 %v60_v4, %s279_s22 }
  0x2e   :  { %157 = vrot.lane.b32.xlu2 %v60_v4, %s280_s23 }
  0x68   :  { %v78_v7 = vpop.permute.xlu2 %77  }
  0x69   :  { %81 = vst.msk [vmem:[#allocation0 + $0x5] ss:$16 sm:$0x3] %vm33_vm0, %v78_v7  }
  0x6a   :  { %83 = vst.msk [vmem:[#allocation0 + $0x5] ss:$16 sm:$0xc] %vm33_vm0, %v78_v7  }
  0x70   :  { %v86_v8 = vpop.permute.xlu2 %85  }
  0x71   :  { %89 = vst.msk [vmem:[#allocation0 + $0x6] ss:$16 sm:$0x3] %vm33_vm0, %v86_v8  }
  0x72   :  { %91 = vst.msk [vmem:[#allocation0 + $0x6] ss:$16 sm:$0xc] %vm33_vm0, %v86_v8  }
  0x78   :  { %v110_v9 = vpop.permute.xlu2 %109  }
  0x79   :  { %113 = vst.msk [vmem:[#allocation0 + $0x9] ss:$16 sm:$0x3] %vm33_vm0, %v110_v9  }
  0x7a   :  { %115 = vst.msk [vmem:[#allocation0 + $0x9] ss:$16 sm:$0xc] %vm33_vm0, %v110_v9  }
  0x7f   :  { %v62_v10 = vpop.permute.xlu1 %61   ;;  %v46_v11 = vpop.permute.xlu0 %45  }
  0x80   :  { %65 = vst.msk [vmem:[#allocation0 + $0x3] ss:$16 sm:$0x3] %vm33_vm0, %v62_v10   ;;  %v134_v12 = vpop.permute.xlu2 %133  }
  0x81   :  { %67 = vst.msk [vmem:[#allocation0 + $0x3] ss:$16 sm:$0xc] %vm33_vm0, %v62_v10  }
  0x82   :  { %49 = vst.msk [vmem:[#allocation0 + $0x1] ss:$16 sm:$0x3] %vm33_vm0, %v46_v11  }
  0x83   :  { %51 = vst.msk [vmem:[#allocation0 + $0x1] ss:$16 sm:$0xc] %vm33_vm0, %v46_v11  }
  0x84   :  { %137 = vst.msk [vmem:[#allocation0 + $0xc] ss:$16 sm:$0x3] %vm33_vm0, %v134_v12  }
  0x85   :  { %139 = vst.msk [vmem:[#allocation0 + $0xc] ss:$16 sm:$0xc] %vm33_vm0, %v134_v12  }
  0x87   :  { %v70_v13 = vpop.permute.xlu1 %69   ;;  %v54_v14 = vpop.permute.xlu0 %53  }
  0x88   :  { %73 = vst.msk [vmem:[#allocation0 + $0x4] ss:$16 sm:$0x3] %vm33_vm0, %v70_v13   ;;  %v158_v15 = vpop.permute.xlu2 %157  }
  0x89   :  { %75 = vst.msk [vmem:[#allocation0 + $0x4] ss:$16 sm:$0xc] %vm33_vm0, %v70_v13  }
  0x8a   :  { %57 = vst.msk [vmem:[#allocation0 + $0x2] ss:$16 sm:$0x3] %vm33_vm0, %v54_v14  }
  0x8b   :  { %59 = vst.msk [vmem:[#allocation0 + $0x2] ss:$16 sm:$0xc] %vm33_vm0, %v54_v14  }
  0x8c   :  { %161 = vst.msk [vmem:[#allocation0 + $0xf] ss:$16 sm:$0x3] %vm33_vm0, %v158_v15  }
  0x8d   :  { %163 = vst.msk [vmem:[#allocation0 + $0xf] ss:$16 sm:$0xc] %vm33_vm0, %v158_v15  }
  0x8f   :  { %v102_v16 = vpop.permute.xlu1 %101   ;;  %v94_v17 = vpop.permute.xlu0 %93  }
  0x90   :  { %105 = vst.msk [vmem:[#allocation0 + $0x8] ss:$16 sm:$0x3] %vm33_vm0, %v102_v16  }
  0x91   :  { %107 = vst.msk [vmem:[#allocation0 + $0x8] ss:$16 sm:$0xc] %vm33_vm0, %v102_v16  }
  0x92   :  { %97 = vst.msk [vmem:[#allocation0 + $0x7] ss:$16 sm:$0x3] %vm33_vm0, %v94_v17  }
  0x93   :  { %99 = vst.msk [vmem:[#allocation0 + $0x7] ss:$16 sm:$0xc] %vm33_vm0, %v94_v17  }
  0x97   :  { %v126_v18 = vpop.permute.xlu1 %125   ;;  %v118_v19 = vpop.permute.xlu0 %117  }
  0x98   :  { %129 = vst.msk [vmem:[#allocation0 + $0xb] ss:$16 sm:$0x3] %vm33_vm0, %v126_v18  }
  0x99   :  { %131 = vst.msk [vmem:[#allocation0 + $0xb] ss:$16 sm:$0xc] %vm33_vm0, %v126_v18   ;;  %v166_v22 = vld [vmem:[#allocation0] sm:$0xff]  ;;  %v179_v23 = vld [vmem:[#allocation0 + $0x10] sm:$0xff] }
  0x9a   :  { %121 = vst.msk [vmem:[#allocation0 + $0xa] ss:$16 sm:$0x3] %vm33_vm0, %v118_v19   ;;  %v193_v24 = vld [vmem:[#allocation0 + $0x20] sm:$0xff]  ;;  %v207_v27 = vld [vmem:[#allocation0 + $0x30] sm:$0xff] }
  0x9b   :  { %123 = vst.msk [vmem:[#allocation0 + $0xa] ss:$16 sm:$0xc] %vm33_vm0, %v118_v19  }
  0x9f   :  { %v150_v20 = vpop.permute.xlu1 %149   ;;  %v142_v21 = vpop.permute.xlu0 %141  }
  0xa0   :  { %153 = vst.msk [vmem:[#allocation0 + $0xe] ss:$16 sm:$0x3] %vm33_vm0, %v150_v20  }
  0xa1   :  { %155 = vst.msk [vmem:[#allocation0 + $0xe] ss:$16 sm:$0xc] %vm33_vm0, %v150_v20  }
  0xa2   :  { %145 = vst.msk [vmem:[#allocation0 + $0xd] ss:$16 sm:$0x3] %vm33_vm0, %v142_v21  }
  0xa3   :  { %147 = vst.msk [vmem:[#allocation0 + $0xd] ss:$16 sm:$0xc] %vm33_vm0, %v142_v21  }
  0xa9   :  { %v172_v25 = vld [vmem:[#allocation0 + $0x8] sm:$0xff]  ;;  %v186_v26 = vld [vmem:[#allocation0 + $0x18] sm:$0xff] }
  0xaa   :  { %v231_v28 = vpack.c.bf16 %v172_v25, %v166_v22  ;;  %v236_v29 = vpack.c.bf16 %v186_v26, %v179_v23  ;;  %v200_v30 = vld [vmem:[#allocation0 + $0x28] sm:$0xff]  ;;  %v214_v31 = vld [vmem:[#allocation0 + $0x38] sm:$0xff] }
  0xab   :  { %v241_v32 = vpack.c.bf16 %v200_v30, %v193_v24  ;;  %v246_v33 = vpack.c.bf16 %v214_v31, %v207_v27 }
  0xac   :  { %232 = vst [vmem:[%s344_s1] sm:$0xff] %v231_v28  }
  0xad   :  { %248 = vst [vmem:[%s344_s1 + $0x8] sm:$0xff] %v236_v29  }
  0xae   :  { %249 = vst [vmem:[%s344_s1 + $0x10] sm:$0xff] %v241_v32  }
  0xaf   :  { %250 = vst [vmem:[%s344_s1 + $0x18] sm:$0xff] %v246_v33  }

// kernel: rotating_conv_transpose2d.5
= control target key start
LH: loop header
LB: loop body
LE: loop exit
PB: predicated region body
PF: predicated region fallthrough
CT: control target
= control target key end

     0   :  { %s267_s6 = smov 0   ;;  %s288_s0 = inlined_call_operand.vmem [shape: f32[2,4,256], index: 0, kind: input, shape index: {}]   ;;  %s289_s1 = inlined_call_operand.vmem [shape: f32[2,1,256], index: 1, kind: output, shape index: {}]  }
   0x1 LB: > { %s226_s7 = sadd.s32 4294967295, %s255_s6   ;;  %p230_p0 = scmp.ge.s32.totalorder %s255_s6, 1  ;;  %s255_s6 = sphi %s267_s6, %s11_s6  }
   0x2   : > { %p87_p1 = scmp.lt.s32.totalorder %s255_s6, 3 }
   0x4   : > { %p88_p2 = pnand %p230_p0, %p87_p1 }
   0x5   : > { %p106_p3 = scmp.lt.s32.totalorder (!%p88_p2), %s226_s7, 1 }
   0x6   : > { %91 = sbr.rel (%p88_p2) target bundleno = 64 (0x40), region = 24 }
   0xb   : > { %s291_s7 = smov (!%p106_p3, %s226_s7), 1  ;;  %vm123_vm0 = vcmask 1043456   ;;  %v168_v32 = vlaneseq  ;;  %vm165_vm4 = vcmask 1040384  }
   0xc   : > { %s236_s8 = sshll.u32 %s291_s7, 3  ;;  %s233_s12 = sshll.u32 %s291_s7, 1 }
   0xd   : > { %s110_s11 = scalar_lea.vmem %s288_s0, %s236_s8  ;;  %s114_s15 = scalar_lea.vmem %s289_s1, %s233_s12  ;;  %vm170_vm6 = vcmp.lt.s32.totalorder %v168_v32, 256 }
   0xe   : > { %v115_v0 = vld [vmem:[%s110_s11] sm:$0xff] }
   0xf   : > { %v116_v1 = vmul.f32 %v115_v0, %v115_v0 }
  0x11   : > { %118 = vst [vmem:[#allocation1] ss:$2 sm:$0xff] %v116_v1 }
  0x18   : > { %v119_v2 = vld.sshfl [vmem:[#allocation1] sm:$0xff pattern:$0x75316420]  ;;  %v120_v3 = vld.sshfl [vmem:[#allocation1 + $0x8] sm:$0xff pattern:$0x75316420] }
  0x19   : > { %v124_v4 = vsel %vm123_vm0, %v119_v2, 0.0  ;;  %v131_v5 = vsel %vm123_vm0, %v120_v3, 0.0 }
  0x1a   : > { %v125_v6 = vrot.slane %v124_v4, 4  ;;  %v132_v7 = vrot.slane %v131_v5, 4 }
  0x1c   : > { %v126_v8 = vadd.f32 %v125_v6, %v124_v4  ;;  %v133_v9 = vadd.f32 %v132_v7, %v131_v5 }
  0x1e   : > { %v134_v10 = vrot.slane %v133_v9, 2  ;;  %v127_v11 = vrot.slane %v126_v8, 2 }
  0x20   : > { %v128_v12 = vadd.f32 %v127_v11, %v126_v8  ;;  %v135_v13 = vadd.f32 %v134_v10, %v133_v9 }
  0x22   : > { %v129_v14 = vrot.slane %v128_v12, 1  ;;  %v136_v15 = vrot.slane %v135_v13, 1 }
  0x24   : > { %v130_v16 = vadd.f32 %v129_v14, %v128_v12  ;;  %v137_v17 = vadd.f32 %v136_v15, %v135_v13 }
  0x26   : > { %245 = vrsqrt.f32 %v130_v16  ;;  %vm145_vm1 = vcmp.eq.f32.partialorder %v130_v16, inf  ;;  %vm157_vm2 = vcmp.eq.f32.partialorder %v137_v17, inf  ;;  %v160_v33 = vand.u32 2147483648, %v137_v17 }
  0x27   : > { %247 = vrsqrt.f32 %v137_v17  ;;  %vm159_vm3 = vcmp.eq.f32.partialorder %v137_v17, 0.0  ;;  %v148_v36 = vand.u32 2147483648, %v130_v16  ;;  %vm147_vm5 = vcmp.eq.f32.partialorder %v130_v16, 0.0 }
  0x2c   : > { %v246_v18 = vpop.eup %245 }
  0x2d   : > { %v248_v19 = vpop.eup %247  ;;  %v139_v20 = vmul.f32 %v246_v18, %v130_v16 }
  0x2e   : > { %v151_v21 = vmul.f32 %v248_v19, %v137_v17 }
  0x2f   : > { %v140_v22 = vmul.f32 %v246_v18, %v139_v20 }
  0x30   : > { %v152_v23 = vmul.f32 %v248_v19, %v151_v21 }
  0x31   : > { %v141_v24 = vmul.f32 0.5, %v140_v22 }
  0x32   : > { %v153_v25 = vmul.f32 0.5, %v152_v23 }
  0x33   : > { %v142_v26 = vsub.f32 1.5, %v141_v24 }
  0x34   : > { %v154_v27 = vsub.f32 1.5, %v153_v25 }
  0x35   : > { %v143_v28 = vmul.f32 %v246_v18, %v142_v26 }
  0x36   : > { %v155_v29 = vmul.f32 %v248_v19, %v154_v27 }
  0x37   : > { %v144_v30 = vmul.f32 %v143_v28, %v130_v16 }
  0x38   : > { %v156_v31 = vmul.f32 %v155_v29, %v137_v17 }
  0x39   : > { %v146_v34 = vsel %vm145_vm1, %v130_v16, %v144_v30 }
  0x3a   : > { %v158_v35 = vsel %vm157_vm2, %v137_v17, %v156_v31  ;;  %v149_v39 = vsel %vm147_vm5, %v148_v36, %v146_v34 }
  0x3b   : > { %v161_v37 = vsel %vm159_vm3, %v160_v33, %v158_v35 }
  0x3c   : > { %v164_v38 = vrot.slane %v161_v37, 7 }
  0x3e   : > { %v166_v40 = vsel %vm165_vm4, %v149_v39, %v164_v38 }
  0x3f   : > { %172 = vst.msk [vmem:[%s114_s15] sm:$0x3] %vm170_vm6, %v166_v40 }
  0x40 PF: > { %s11_s6 = sadd.s32 1, %s255_s6  }
  0x41   : > { %p8_p4 = scmp.ge.s32.totalorder %s11_s6, 4  }
  0x43   :  { %10 = sbr.rel (!%p8_p4) target bundleno = 1 (0x1), region = 54 }

// kernel: rotating_conv_transpose2d.6
= control target key start
LH: loop header
LB: loop body
LE: loop exit
PB: predicated region body
PF: predicated region fallthrough
CT: control target
= control target key end

     0   :  { %s676_s15 = smov 0   ;;  %s678_s16 = smov 0   ;;  %s752_s0 = inlined_call_operand.vmem [shape: bf16[8,16], index: 0, kind: input, shape index: {}]   ;;  %s753_s1 = inlined_call_operand.vmem [shape: f32[5,8,1], index: 1, kind: input, shape index: {}]   ;;  %s754_s2 = inlined_call_operand.vmem [shape: bf16[2,5,16,128], index: 2, kind: input, shape index: {}]   ;;  %s755_s3 = inlined_call_operand.vmem [shape: f32[2,4,8,128], index: 3, kind: output, shape index: {0}]   ;;  %s756_s4 = inlined_call_operand.vmem [shape: f32[2,8,128], index: 4, kind: output, shape index: {1}]  }
   0x1   :  { %s680_s17 = smov 0   ;;  %s682_s18 = smov 0  }
   0x2   :  { %s684_s19 = smov 0  }
   0x3 LB: > { %s27_s20 = sadd.s32 1, %s639_s17  ;;  %s34_s21 = sadd.s32 1, %s643_s18  ;;  %s647_s19 = sphi %s684_s19, %s15_s19   ;;  %s643_s18 = sphi %s682_s18, %s760_s18   ;;  %s639_s17 = sphi %s680_s17, %s759_s17   ;;  %s635_s16 = sphi %s678_s16, %s758_s16   ;;  %s631_s15 = sphi %s676_s15, %s757_s15  }
   0x4   : > { %p28_p0 = scmp.ge.s32.totalorder %s27_s20, 5  ;;  %p542_p1 = scmp.ge.s32.totalorder %s647_s19, 1 }
   0x5   : > { %p214_p2 = scmp.lt.s32.totalorder %s647_s19, 11 }
   0x6   : > { %s762_s20 = smov (%p28_p0, %s27_s20), 0  ;;  %s764_s21 = smov (!%p28_p0, %s34_s21), %s643_s18 }
   0x7   : > { %p215_p3 = pnand %p542_p1, %p214_p2  ;;  %p36_p4 = scmp.ge.s32.totalorder %s764_s21, 2 }
   0x8   : > { %p266_p5 = scmp.lt.s32.totalorder (!%p215_p3), %s631_s15, 4  ;;  %p270_p6 = scmp.lt.s32.totalorder (!%p215_p3), %s635_s16, 1 }
   0x9   : > { %s766_s21 = smov (%p36_p4, %s764_s21), 0  ;;  %218 = sbr.rel (%p215_p3) target bundleno = 325 (0x145), region = 32 }
   0xa   : > { %p282_p7 = scmp.lt.s32.totalorder (!%p215_p3), %s631_s15, 3  ;;  %p552_p8 = scmp.ne.s32.totalorder (!%p215_p3), %s631_s15, 0 }
   0xe   : > { %s267_s22 = scalar_select %p266_p5, %s631_s15, 4 }
   0xf   : > { %s768_s16 = smov (!%p270_p6, %s635_s16), 1 }
  0x10   : > { %s543_s23 = sshll.u32 %s267_s22, 3  ;;  %s544_s24 = sshll.u32 %s267_s22, 1 }
  0x11   : > { %s269_s27 = scalar_lea.vmem %s753_s1, %s543_s23  ;;  %s563_s28 = smul.u32 10, %s768_s16 }
  0x12   : > { %s283_s29 = scalar_select %p282_p7, %s631_s15, 3 }
  0x13   : > { %s279_s30 = sadd.s32 %s563_s28, %s544_s24  ;;  %s549_s5 = sshll.u32 %s768_s16, 2 }
  0x14   : > { %s545_s6 = sshll.u32 %s279_s30, 2  ;;  %s551_s7 = sshll.u32 %s768_s16, 3 }
  0x15   : > { %s281_s10 = scalar_lea.vmem %s754_s2, %s545_s6  ;;  %s723_s13 = scalar_lea.vmem %s756_s4, %s551_s7 }
  0x16   : > { %s770_s29 = smov (!%p282_p7, %s283_s29), 3  ;;  %308 = sbr.rel (%p552_p8) target bundleno = 29 (0x1d), region = 36 }
  0x17   : > { %s292_s14 = sadd.s32 %s549_s5, %s770_s29 }
  0x18   : > { %s550_s22 = sshll.u32 %s292_s14, 3 }
  0x19   : > { %s294_s24 = scalar_lea.vmem %s755_s3, %s550_s22 }
  0x1b   : > { %v649_v0 = vmov 0.0  }
  0x1c   : > { %309 = vst [vmem:[#allocation2] sm:$0xff] %v649_v0 }
  0x1d PF: > { %v562_v1 = vld [vmem:[%s281_s10] sm:$0xff]  ;;  %vm319_vm0 = vcmask 130048   ;;  %p558_p9 = scmp.ge.s32.totalorder %s631_s15, 4 }
  0x1e   : > { %330 = vmatpush.bf16.msra.mxu0 %v562_v1  ;;  %v310_v2 = vld [vmem:[%s752_s0] sm:$0xf] }
  0x21   : > { %557 = vmatmul.msk.bf16.vlgmr.msra.gmra.mxu0 %vm319_vm0, %v310_v2 }
  0x9e   : > { %v332_v3 = vpop.f32.mrf.mxu0 }
  0xa2   : > { %339 = sbr.rel (%p558_p9) target bundleno = 291 (0x123), region = 40 }
  0xa6   : > { %v334_v4 = vpop.f32.mrf.mxu0 }
  0xa7   : > { %v340_v5 = vld [vmem:[%s269_s27] sm:$0xff]  ;;  %v650_v6 = vmov 0  }
  0xa8   : > { %606 = vset.pattern.permute.xlu0 %v650_v6  ;;  %v348_v9 = vld [vmem:[#allocation2] sm:$0xff] }
  0xa9   : > { %343 = vperm.xlu0 %606, %v340_v5  }
 0x11b   : > { %v344_v7 = vpop.permute.xlu0 %343 }
 0x11c   : > { %v346_v8 = vadd.f32 %v344_v7, %v332_v3 }
 0x11e   : > { %347 = vst [vmem:[%s294_s24] sm:$0xff] %v346_v8  ;;  %v349_v10 = vmul.f32 %v346_v8, %v346_v8 }
 0x120   : > { %v350_v11 = vadd.f32 %v349_v10, %v348_v9 }
 0x122   : > { %351 = vst [vmem:[#allocation2] sm:$0xff] %v350_v11 }
 0x123 PF: > { %p559_p10 = scmp.ne.s32.totalorder %s631_s15, 4 }
 0x125   : > { %355 = sbr.rel (%p559_p10) target bundleno = 325 (0x145), region = 44 }
 0x12a   : > { %v356_v12 = vld [vmem:[#allocation2] sm:$0xff]  ;;  %v370_v22 = vmul.f32 0.5, %v332_v3 }
 0x12b   : > { %607 = vrsqrt.f32 %v356_v12  ;;  %vm364_vm1 = vcmp.eq.f32.partialorder %v356_v12, inf  ;;  %v367_v19 = vand.u32 2147483648, %v356_v12  ;;  %vm366_vm2 = vcmp.eq.f32.partialorder %v356_v12, 0.0 }
 0x131   : > { %v608_v13 = vpop.eup %607 }
 0x132   : > { %v358_v14 = vmul.f32 %v608_v13, %v356_v12 }
 0x134   : > { %v359_v15 = vmul.f32 %v608_v13, %v358_v14 }
 0x136   : > { %v360_v16 = vmul.f32 0.5, %v359_v15 }
 0x138   : > { %v361_v17 = vsub.f32 1.5, %v360_v16 }
 0x13a   : > { %v362_v18 = vmul.f32 %v608_v13, %v361_v17 }
 0x13c   : > { %v363_v20 = vmul.f32 %v362_v18, %v356_v12 }
 0x13e   : > { %v365_v21 = vsel %vm364_vm1, %v356_v12, %v363_v20 }
 0x13f   : > { %v368_v23 = vsel %vm366_vm2, %v367_v19, %v365_v21 }
 0x140   : > { %v369_v24 = vmul.f32 0.5, %v368_v23 }
 0x142   : > { %v371_v25 = vadd.f32 %v370_v22, %v369_v24 }
 0x144   : > { %372 = vst [vmem:[%s723_s13] sm:$0xff] %v371_v25 }
 0x145 PF: > { %s15_s19 = sadd.s32 1, %s647_s19   ;;  %s757_s15 = smov %s639_s17 }
 0x146   : > { %p12_p11 = scmp.ge.s32.totalorder %s15_s19, 12   ;;  %s758_s16 = smov %s643_s18 }
 0x147   : > { %s759_s17 = smov %s762_s20  ;;  %s760_s18 = smov %s766_s21 }
 0x148   :  { %14 = sbr.rel (!%p12_p11) target bundleno = 3 (0x3), region = 89 }

// kernel: rotating_conv_transpose2d.7
= control target key start
LH: loop header
LB: loop body
LE: loop exit
PB: predicated region body
PF: predicated region fallthrough
CT: control target
= control target key end

     0   :  { %s661_s15 = smov 0   ;;  %s663_s16 = smov 0   ;;  %s733_s0 = inlined_call_operand.vmem [shape: bf16[8,8], index: 0, kind: input, shape index: {}]   ;;  %s734_s1 = inlined_call_operand.vmem [shape: f32[5,8,1], index: 1, kind: input, shape index: {}]   ;;  %s735_s2 = inlined_call_operand.vmem [shape: bf16[2,5,8,128], index: 2, kind: input, shape index: {}]   ;;  %s736_s3 = inlined_call_operand.vmem [shape: f32[2,4,8,128], index: 3, kind: output, shape index: {0}]   ;;  %s737_s4 = inlined_call_operand.vmem [shape: f32[2,8,128], index: 4, kind: output, shape index: {1}]  }
   0x1   :  { %s665_s17 = smov 0   ;;  %s667_s18 = smov 0  }
   0x2   :  { %s669_s19 = smov 0  }
   0x3 LB: > { %s27_s20 = sadd.s32 1, %s624_s17  ;;  %s34_s21 = sadd.s32 1, %s628_s18  ;;  %s632_s19 = sphi %s669_s19, %s15_s19   ;;  %s628_s18 = sphi %s667_s18, %s741_s18   ;;  %s624_s17 = sphi %s665_s17, %s740_s17   ;;  %s620_s16 = sphi %s663_s16, %s739_s16   ;;  %s616_s15 = sphi %s661_s15, %s738_s15  }
   0x4   : > { %p28_p0 = scmp.ge.s32.totalorder %s27_s20, 5  ;;  %p533_p1 = scmp.ge.s32.totalorder %s632_s19, 1 }
   0x5   : > { %p213_p2 = scmp.lt.s32.totalorder %s632_s19, 11 }
   0x6   : > { %s743_s20 = smov (%p28_p0, %s27_s20), 0  ;;  %s745_s21 = smov (!%p28_p0, %s34_s21), %s628_s18 }
   0x7   : > { %p214_p3 = pnand %p533_p1, %p213_p2  ;;  %p36_p4 = scmp.ge.s32.totalorder %s745_s21, 2 }
   0x8   : > { %p264_p5 = scmp.lt.s32.totalorder (!%p214_p3), %s616_s15, 4  ;;  %p268_p6 = scmp.lt.s32.totalorder (!%p214_p3), %s620_s16, 1 }
   0x9   : > { %s747_s21 = smov (%p36_p4, %s745_s21), 0  ;;  %217 = sbr.rel (%p214_p3) target bundleno = 326 (0x146), region = 32 }
   0xa   : > { %p279_p7 = scmp.lt.s32.totalorder (!%p214_p3), %s616_s15, 3  ;;  %p542_p8 = scmp.ne.s32.totalorder (!%p214_p3), %s616_s15, 0 }
   0xe   : > { %s265_s22 = scalar_select %p264_p5, %s616_s15, 4 }
   0xf   : > { %s749_s16 = smov (!%p268_p6, %s620_s16), 1 }
  0x10   : > { %s534_s23 = sshll.u32 %s265_s22, 3  ;;  %s548_s27 = smul.u32 5, %s749_s16 }
  0x11   : > { %s267_s26 = scalar_lea.vmem %s734_s1, %s534_s23  ;;  %s539_s30 = sshll.u32 %s749_s16, 2 }
  0x12   : > { %s280_s28 = scalar_select %p279_p7, %s616_s15, 3 }
  0x13   : > { %s276_s29 = sadd.s32 %s548_s27, %s265_s22  ;;  %s541_s6 = sshll.u32 %s749_s16, 3 }
  0x14   : > { %s535_s5 = sshll.u32 %s276_s29, 2  ;;  %s706_s12 = scalar_lea.vmem %s737_s4, %s541_s6 }
  0x15   : > { %s278_s9 = scalar_lea.vmem %s735_s2, %s535_s5  ;;  %s751_s28 = smov (!%p279_p7, %s280_s28), 3 }
  0x16   : > { %s289_s13 = sadd.s32 %s539_s30, %s751_s28  ;;  %305 = sbr.rel (%p542_p8) target bundleno = 29 (0x1d), region = 36 }
  0x17   : > { %s540_s14 = sshll.u32 %s289_s13, 3 }
  0x18   : > { %s291_s25 = scalar_lea.vmem %s736_s3, %s540_s14 }
  0x1b   : > { %v634_v0 = vmov 0.0  }
  0x1c   : > { %306 = vst [vmem:[#allocation2] sm:$0xff] %v634_v0 }
  0x1d PF: > { %v308_v1 = vld [vmem:[%s278_s9] sm:$0xf]  ;;  %vm313_vm0 = vcmask 1043456   ;;  %vm309_vm1 = vcmask 64512   ;;  %p544_p9 = scmp.ge.s32.totalorder %s616_s15, 4 }
  0x1e   : > { %v315_v2 = vsel %vm313_vm0, %v308_v1, 0  ;;  %v307_v3 = vld [vmem:[%s733_s0] sm:$0xf] }
  0x1f   : > { %324 = vmatpush.bf16.msra.mxu0 %v315_v2 }
  0x22   : > { %543 = vmatmul.msk.bf16.vlgmr.msra.gmra.mxu0 %vm309_vm1, %v307_v3 }
  0x9f   : > { %v326_v4 = vpop.f32.mrf.mxu0 }
  0xa3   : > { %333 = sbr.rel (%p544_p9) target bundleno = 292 (0x124), region = 40 }
  0xa7   : > { %v328_v5 = vpop.f32.mrf.mxu0 }
  0xa8   : > { %v334_v6 = vld [vmem:[%s267_s26] sm:$0xff]  ;;  %v635_v7 = vmov 0  }
  0xa9   : > { %591 = vset.pattern.permute.xlu0 %v635_v7  ;;  %v342_v10 = vld [vmem:[#allocation2] sm:$0xff] }
  0xaa   : > { %337 = vperm.xlu0 %591, %v334_v6  }
 0x11c   : > { %v338_v8 = vpop.permute.xlu0 %337 }
 0x11d   : > { %v340_v9 = vadd.f32 %v338_v8, %v326_v4 }
 0x11f   : > { %341 = vst [vmem:[%s291_s25] sm:$0xff] %v340_v9  ;;  %v343_v11 = vmul.f32 %v340_v9, %v340_v9 }
 0x121   : > { %v344_v12 = vadd.f32 %v343_v11, %v342_v10 }
 0x123   : > { %345 = vst [vmem:[#allocation2] sm:$0xff] %v344_v12 }
 0x124 PF: > { %p545_p10 = scmp.ne.s32.totalorder %s616_s15, 4 }
 0x126   : > { %349 = sbr.rel (%p545_p10) target bundleno = 326 (0x146), region = 44 }
 0x12b   : > { %v350_v13 = vld [vmem:[#allocation2] sm:$0xff]  ;;  %v364_v23 = vmul.f32 0.5, %v326_v4 }
 0x12c   : > { %592 = vrsqrt.f32 %v350_v13  ;;  %vm358_vm2 = vcmp.eq.f32.partialorder %v350_v13, inf  ;;  %v361_v20 = vand.u32 2147483648, %v350_v13  ;;  %vm360_vm3 = vcmp.eq.f32.partialorder %v350_v13, 0.0 }
 0x132   : > { %v593_v14 = vpop.eup %592 }
 0x133   : > { %v352_v15 = vmul.f32 %v593_v14, %v350_v13 }
 0x135   : > { %v353_v16 = vmul.f32 %v593_v14, %v352_v15 }
 0x137   : > { %v354_v17 = vmul.f32 0.5, %v353_v16 }
 0x139   : > { %v355_v18 = vsub.f32 1.5, %v354_v17 }
 0x13b   : > { %v356_v19 = vmul.f32 %v593_v14, %v355_v18 }
 0x13d   : > { %v357_v21 = vmul.f32 %v356_v19, %v350_v13 }
 0x13f   : > { %v359_v22 = vsel %vm358_vm2, %v350_v13, %v357_v21 }
 0x140   : > { %v362_v24 = vsel %vm360_vm3, %v361_v20, %v359_v22 }
 0x141   : > { %v363_v25 = vmul.f32 0.5, %v362_v24 }
 0x143   : > { %v365_v26 = vadd.f32 %v364_v23, %v363_v25 }
 0x145   : > { %366 = vst [vmem:[%s706_s12] sm:$0xff] %v365_v26 }
 0x146 PF: > { %s15_s19 = sadd.s32 1, %s632_s19   ;;  %s738_s15 = smov %s624_s17 }
 0x147   : > { %p12_p11 = scmp.ge.s32.totalorder %s15_s19, 12   ;;  %s739_s16 = smov %s628_s18 }
 0x148   : > { %s740_s17 = smov %s743_s20  ;;  %s741_s18 = smov %s747_s21 }
 0x149   :  { %14 = sbr.rel (!%p12_p11) target bundleno = 3 (0x3), region = 89 }

// kernel: rotating_conv_transpose2d.9
= control target key start
LH: loop header
LB: loop body
LE: loop exit
PB: predicated region body
PF: predicated region fallthrough
CT: control target
= control target key end

     0   :  { %s661_s15 = smov 0   ;;  %s663_s16 = smov 0   ;;  %s733_s0 = inlined_call_operand.vmem [shape: bf16[8,4], index: 0, kind: input, shape index: {}]   ;;  %s734_s1 = inlined_call_operand.vmem [shape: f32[5,8,1], index: 1, kind: input, shape index: {}]   ;;  %s735_s2 = inlined_call_operand.vmem [shape: bf16[2,5,4,128], index: 2, kind: input, shape index: {}]   ;;  %s736_s3 = inlined_call_operand.vmem [shape: f32[2,4,8,128], index: 3, kind: output, shape index: {0}]   ;;  %s737_s4 = inlined_call_operand.vmem [shape: f32[2,8,128], index: 4, kind: output, shape index: {1}]  }
   0x1   :  { %s665_s17 = smov 0   ;;  %s667_s18 = smov 0  }
   0x2   :  { %s669_s19 = smov 0  }
   0x3 LB: > { %s27_s20 = sadd.s32 1, %s624_s17  ;;  %s34_s21 = sadd.s32 1, %s628_s18  ;;  %s632_s19 = sphi %s669_s19, %s15_s19   ;;  %s628_s18 = sphi %s667_s18, %s741_s18   ;;  %s624_s17 = sphi %s665_s17, %s740_s17   ;;  %s620_s16 = sphi %s663_s16, %s739_s16   ;;  %s616_s15 = sphi %s661_s15, %s738_s15  }
   0x4   : > { %p28_p0 = scmp.ge.s32.totalorder %s27_s20, 5  ;;  %p533_p1 = scmp.ge.s32.totalorder %s632_s19, 1 }
   0x5   : > { %p213_p2 = scmp.lt.s32.totalorder %s632_s19, 11 }
   0x6   : > { %s743_s20 = smov (%p28_p0, %s27_s20), 0  ;;  %s745_s21 = smov (!%p28_p0, %s34_s21), %s628_s18 }
   0x7   : > { %p214_p3 = pnand %p533_p1, %p213_p2  ;;  %p36_p4 = scmp.ge.s32.totalorder %s745_s21, 2 }
   0x8   : > { %p264_p5 = scmp.lt.s32.totalorder (!%p214_p3), %s616_s15, 4  ;;  %p268_p6 = scmp.lt.s32.totalorder (!%p214_p3), %s620_s16, 1 }
   0x9   : > { %s747_s21 = smov (%p36_p4, %s745_s21), 0  ;;  %217 = sbr.rel (%p214_p3) target bundleno = 326 (0x146), region = 32 }
   0xa   : > { %p279_p7 = scmp.lt.s32.totalorder (!%p214_p3), %s616_s15, 3  ;;  %p542_p8 = scmp.ne.s32.totalorder (!%p214_p3), %s616_s15, 0 }
   0xe   : > { %s265_s22 = scalar_select %p264_p5, %s616_s15, 4 }
   0xf   : > { %s749_s16 = smov (!%p268_p6, %s620_s16), 1 }
  0x10   : > { %s534_s23 = sshll.u32 %s265_s22, 3  ;;  %s548_s27 = smul.u32 5, %s749_s16 }
  0x11   : > { %s267_s26 = scalar_lea.vmem %s734_s1, %s534_s23  ;;  %s539_s30 = sshll.u32 %s749_s16, 2 }
  0x12   : > { %s280_s28 = scalar_select %p279_p7, %s616_s15, 3 }
  0x13   : > { %s276_s29 = sadd.s32 %s548_s27, %s265_s22  ;;  %s541_s6 = sshll.u32 %s749_s16, 3 }
  0x14   : > { %s535_s5 = sshll.u32 %s276_s29, 1  ;;  %s706_s12 = scalar_lea.vmem %s737_s4, %s541_s6 }
  0x15   : > { %s278_s9 = scalar_lea.vmem %s735_s2, %s535_s5  ;;  %s751_s28 = smov (!%p279_p7, %s280_s28), 3 }
  0x16   : > { %s289_s13 = sadd.s32 %s539_s30, %s751_s28  ;;  %305 = sbr.rel (%p542_p8) target bundleno = 29 (0x1d), region = 36 }
  0x17   : > { %s540_s14 = sshll.u32 %s289_s13, 3 }
  0x18   : > { %s291_s25 = scalar_lea.vmem %s736_s3, %s540_s14 }
  0x1b   : > { %v634_v0 = vmov 0.0  }
  0x1c   : > { %306 = vst [vmem:[#allocation2] sm:$0xff] %v634_v0 }
  0x1d PF: > { %v308_v1 = vld [vmem:[%s278_s9] sm:$0x3]  ;;  %vm313_vm0 = vcmask 1041408   ;;  %vm309_vm1 = vcmask 31744   ;;  %p544_p9 = scmp.ge.s32.totalorder %s616_s15, 4 }
  0x1e   : > { %v315_v2 = vsel %vm313_vm0, %v308_v1, 0  ;;  %v307_v3 = vld [vmem:[%s733_s0] sm:$0xf] }
  0x1f   : > { %324 = vmatpush.bf16.msra.mxu0 %v315_v2 }
  0x22   : > { %543 = vmatmul.msk.bf16.vlgmr.msra.gmra.mxu0 %vm309_vm1, %v307_v3 }
  0x9f   : > { %v326_v4 = vpop.f32.mrf.mxu0 }
  0xa3   : > { %333 = sbr.rel (%p544_p9) target bundleno = 292 (0x124), region = 40 }
  0xa7   : > { %v328_v5 = vpop.f32.mrf.mxu0 }
  0xa8   : > { %v334_v6 = vld [vmem:[%s267_s26] sm:$0xff]  ;;  %v635_v7 = vmov 0  }
  0xa9   : > { %591 = vset.pattern.permute.xlu0 %v635_v7  ;;  %v342_v10 = vld [vmem:[#allocation2] sm:$0xff] }
  0xaa   : > { %337 = vperm.xlu0 %591, %v334_v6  }
 0x11c   : > { %v338_v8 = vpop.permute.xlu0 %337 }
 0x11d   : > { %v340_v9 = vadd.f32 %v338_v8, %v326_v4 }
 0x11f   : > { %341 = vst [vmem:[%s291_s25] sm:$0xff] %v340_v9  ;;  %v343_v11 = vmul.f32 %v340_v9, %v340_v9 }
 0x121   : > { %v344_v12 = vadd.f32 %v343_v11, %v342_v10 }
 0x123   : > { %345 = vst [vmem:[#allocation2] sm:$0xff] %v344_v12 }
 0x124 PF: > { %p545_p10 = scmp.ne.s32.totalorder %s616_s15, 4 }
 0x126   : > { %349 = sbr.rel (%p545_p10) target bundleno = 326 (0x146), region = 44 }
 0x12b   : > { %v350_v13 = vld [vmem:[#allocation2] sm:$0xff]  ;;  %v364_v23 = vmul.f32 0.5, %v326_v4 }
 0x12c   : > { %592 = vrsqrt.f32 %v350_v13  ;;  %vm358_vm2 = vcmp.eq.f32.partialorder %v350_v13, inf  ;;  %v361_v20 = vand.u32 2147483648, %v350_v13  ;;  %vm360_vm3 = vcmp.eq.f32.partialorder %v350_v13, 0.0 }
 0x132   : > { %v593_v14 = vpop.eup %592 }
 0x133   : > { %v352_v15 = vmul.f32 %v593_v14, %v350_v13 }
 0x135   : > { %v353_v16 = vmul.f32 %v593_v14, %v352_v15 }
 0x137   : > { %v354_v17 = vmul.f32 0.5, %v353_v16 }
 0x139   : > { %v355_v18 = vsub.f32 1.5, %v354_v17 }
 0x13b   : > { %v356_v19 = vmul.f32 %v593_v14, %v355_v18 }
 0x13d   : > { %v357_v21 = vmul.f32 %v356_v19, %v350_v13 }
 0x13f   : > { %v359_v22 = vsel %vm358_vm2, %v350_v13, %v357_v21 }
 0x140   : > { %v362_v24 = vsel %vm360_vm3, %v361_v20, %v359_v22 }
 0x141   : > { %v363_v25 = vmul.f32 0.5, %v362_v24 }
 0x143   : > { %v365_v26 = vadd.f32 %v364_v23, %v363_v25 }
 0x145   : > { %366 = vst [vmem:[%s706_s12] sm:$0xff] %v365_v26 }
 0x146 PF: > { %s15_s19 = sadd.s32 1, %s632_s19   ;;  %s738_s15 = smov %s624_s17 }
 0x147   : > { %p12_p11 = scmp.ge.s32.totalorder %s15_s19, 12   ;;  %s739_s16 = smov %s628_s18 }
 0x148   : > { %s740_s17 = smov %s743_s20  ;;  %s741_s18 = smov %s747_s21 }
 0x149   :  { %14 = sbr.rel (!%p12_p11) target bundleno = 3 (0x3), region = 89 }

</bundles_post_ra>
